<compile_context>
chip_gen: v7x
topology: tpu7x:2x2x1
jax: 0.10.0
libtpu: 0.0.40
codegen_flags: <defaults>
</compile_context>

<pallas_src>
import functools

import jax
import jax.numpy as jnp
from jax.experimental import pallas as pl
from jax.experimental.pallas import tpu as pltpu


def _round_up(x, m):
    return (x + m - 1) // m * m


def _cdiv(a, b):
    return (a + b - 1) // b


def _amp_mlp_kernel(x_ref, w0_ref, b0_ref, w1_ref, b1_ref, w2_ref, b2_ref,
                    out_ref):
    """3-layer Linear+ReLU MLP on one batch tile (bf16 MXU, f32 accumulate)."""
    # Layer 0 (input already concatenated + lane-padded in the wrapper).
    h = jnp.dot(x_ref[...], w0_ref[...], preferred_element_type=jnp.float32)
    h = jnp.maximum(h + b0_ref[...], 0.0)

    # Layer 1.
    h = jnp.dot(h.astype(jnp.bfloat16), w1_ref[...],
                preferred_element_type=jnp.float32)
    h = jnp.maximum(h + b1_ref[...], 0.0)

    # Layer 2.
    h = jnp.dot(h.astype(jnp.bfloat16), w2_ref[...],
                preferred_element_type=jnp.float32)
    h = jnp.maximum(h + b2_ref[...], 0.0)

    out_ref[...] = h.astype(out_ref.dtype)


def prepare_params(params, obs_size, latent_size):
    """One-time weight preparation (outside the per-call path).

    Pads every feature dim to a multiple of 128 with zeros (exact math: the
    matching padded input lanes are zero) and casts weights to bf16 for the
    MXU.  Biases stay f32.  Weights are (in_features, out_features), i.e.
    torch Linear.weight^T.
    """
    din = obs_size + latent_size
    w0, w1, w2 = params["w0"], params["w1"], params["w2"]
    b0, b1, b2 = params["b0"], params["b1"], params["b2"]
    assert w0.shape[0] == din
    din_p = _round_up(din, 128)
    h0_p = _round_up(w0.shape[1], 128)
    h1_p = _round_up(w1.shape[1], 128)
    h2_p = _round_up(w2.shape[1], 128)

    def pad_w(w, rows, cols):
        return jnp.pad(w, ((0, rows - w.shape[0]),
                           (0, cols - w.shape[1]))).astype(jnp.bfloat16)

    def pad_b(b, cols):
        return jnp.pad(b, ((0, 0), (0, cols - b.shape[1]))).astype(jnp.float32)

    return {
        "w0": pad_w(w0, din_p, h0_p), "b0": pad_b(b0, h0_p),
        "w1": pad_w(w1, h0_p, h1_p), "b1": pad_b(b1, h1_p),
        "w2": pad_w(w2, h1_p, h2_p), "b2": pad_b(b2, h2_p),
    }


@functools.partial(jax.jit,
                   static_argnames=("out_dim", "skip_style", "tile_m",
                                    "weight_buffer_count"))
def amp_mlp_forward(obs, latent, prepared, out_dim=None, skip_style=False,
                    tile_m=512, weight_buffer_count=2):
    """Pallas-backed AMPMLPNet forward.

    obs: (B, obs_size) f32; latent: (B, latent_size) f32.
    prepared: output of prepare_params() (padded bf16 weights / f32 biases).
    out_dim: true output width; None returns the 128-lane-padded output
      (preferred in production: skips an extra HBM pass for the slice).
    weight_buffer_count: 1 single-buffers the VMEM-resident weights
      (recommended on v7x at production widths); 2 = default pipelining.
    """
    del skip_style  # accepted but unused, as in the torch forward
    B = obs.shape[0]
    w0, b0 = prepared["w0"], prepared["b0"]
    w1, b1 = prepared["w1"], prepared["b1"]
    w2, b2 = prepared["w2"], prepared["b2"]
    din_p, h0_p = w0.shape
    h1_p = w1.shape[1]
    h2_p = w2.shape[1]
    din = obs.shape[1] + latent.shape[1]
    assert din <= din_p

    # Concat + lane-pad + bf16 cast in one fused wrapper pass: no in-kernel
    # concat and no split layer-0 matmul.
    x = jnp.concatenate([obs, latent], axis=-1)
    x = jnp.pad(x, ((0, 0), (0, din_p - din))).astype(jnp.bfloat16)

    # Batch tile: multiple of 8 sublanes; capped near B/2 so a 2-TensorCore
    # chip (v7x) gets >= 2 parallel tiles when B allows it.  No batch padding:
    # cdiv grid + ragged last block (rows are independent, stores masked).
    tm = max(8, min(_round_up(tile_m, 8), _round_up(_cdiv(B, 2), 8)))
    grid = (_cdiv(B, tm),)

    def tiled(cols):
        # Batch-tiled operand: new block per grid step.
        return pl.BlockSpec((tm, cols), lambda i: (i, 0))

    def resident(shape):
        # Whole-array block, constant index -> VMEM-resident across tiles.
        if weight_buffer_count == 2:
            return pl.BlockSpec(shape, lambda i: (0, 0))
        return pl.BlockSpec(shape, lambda i: (0, 0),
                            pipeline_mode=pl.Buffered(weight_buffer_count))

    # Rough VMEM footprint; raise the scoped limit only when needed (v5e's
    # default is 16 MiB).  TODO(synk): on v7x (64 MiB physical) production
    # widths should instead add a K/N grid axis with an f32 accumulator.
    est = (2 * tm * din_p * 2 + 2 * tm * h2_p * 4
           + weight_buffer_count * 2 * (din_p * h0_p + h0_p * h1_p + h1_p * h2_p)
           + weight_buffer_count * 4 * (h0_p + h1_p + h2_p)
           + 2 * tm * max(h0_p, h1_p) * 4)
    vmem_limit = int(min(est * 3 // 2 + (1 << 20), 60 * (1 << 20)))

    out_p = pl.pallas_call(
        _amp_mlp_kernel,
        out_shape=jax.ShapeDtypeStruct((B, h2_p), jnp.float32),
        grid_spec=pltpu.PrefetchScalarGridSpec(
            num_scalar_prefetch=0,
            grid=grid,
            in_specs=[
                tiled(din_p),                                   # concat input
                resident(w0.shape), resident(b0.shape),
                resident(w1.shape), resident(b1.shape),
                resident(w2.shape), resident(b2.shape),
            ],
            out_specs=tiled(h2_p),
        ),
        compiler_params=pltpu.CompilerParams(
            dimension_semantics=("parallel",),                  # batch tiles
            vmem_limit_bytes=vmem_limit if est > (12 << 20) else None,
        ),
    )(x, w0, b0, w1, b1, w2, b2)

    if out_dim is None or out_dim == h2_p:
        return out_p
    return out_p[:, :out_dim]


def init_params(key, obs_size, latent_size, units):
    """Mirrors AMPMLPNet.init_params: initializer(weight), zeros(bias)."""
    in_size = obs_size + latent_size
    params = {}
    keys = jax.random.split(key, len(units))
    for i, (u, k) in enumerate(zip(units, keys)):
        w = jax.random.normal(k, (in_size, u), jnp.float32) / jnp.sqrt(
            jnp.float32(in_size))
        params[f"w{i}"] = w
        params[f"b{i}"] = jnp.zeros((1, u), jnp.float32)
        in_size = u
    return params


def reference_forward_f32(obs, latent, params):
    """Pure-f32 pure-JAX reference (module semantics)."""
    h = jnp.concatenate([obs, latent], axis=-1)
    for i in range(3):
        h = jnp.maximum(h @ params[f"w{i}"] + params[f"b{i}"], 0.0)
    return h


def reference_forward_mixed(obs, latent, params):
    """Pure-JAX reference with the same bf16-matmul/f32-accumulate scheme."""
    h = jnp.concatenate([obs, latent], axis=-1).astype(jnp.bfloat16)
    z = None
    for i in range(3):
        w = params[f"w{i}"].astype(jnp.bfloat16)
        z = jnp.dot(h, w, preferred_element_type=jnp.float32) + params[f"b{i}"]
        z = jnp.maximum(z, 0.0)
        h = z.astype(jnp.bfloat16)
    return z


if __name__ == "__main__":
    OBS_SIZE, LATENT_SIZE = 24, 8
    UNITS = (64, 32, 16)

    key = jax.random.PRNGKey(0)
    k_obs, k_lat, k_par, k_obs2, k_lat2 = jax.random.split(key, 5)
    params = init_params(k_par, OBS_SIZE, LATENT_SIZE, UNITS)
    prepared = prepare_params(params, OBS_SIZE, LATENT_SIZE)

    # Primary small-shape run.
    B = 8
    obs = jax.random.normal(k_obs, (B, OBS_SIZE), jnp.float32)
    latent = jax.random.normal(k_lat, (B, LATENT_SIZE), jnp.float32)
    out = jax.block_until_ready(
        amp_mlp_forward(obs, latent, prepared, out_dim=UNITS[-1]))
    assert out.shape == (B, UNITS[-1])
    ref_mixed = reference_forward_mixed(obs, latent, params)
    ref_f32 = reference_forward_f32(obs, latent, params)
    assert jnp.allclose(out, ref_mixed, atol=1e-3, rtol=1e-3), \
        "mismatch vs mixed-precision reference"
    assert jnp.allclose(out, ref_f32, atol=5e-2, rtol=5e-2), \
        "mismatch vs f32 reference"

    # Ragged batch (not a multiple of the tile): exercises the cdiv grid with
    # two batch tiles and a masked last-block store.
    B2 = 20
    obs2 = jax.random.normal(k_obs2, (B2, OBS_SIZE), jnp.float32)
    latent2 = jax.random.normal(k_lat2, (B2, LATENT_SIZE), jnp.float32)
    out2 = jax.block_until_ready(
        amp_mlp_forward(obs2, latent2, prepared, out_dim=UNITS[-1]))
    assert out2.shape == (B2, UNITS[-1])
    assert jnp.allclose(out2, reference_forward_mixed(obs2, latent2, params),
                        atol=1e-3, rtol=1e-3), "ragged-batch mismatch"

    print("KERNEL_OK")
</pallas_src>

<mosaic_0001>
module attributes {stable_mosaic.version = 11 : i64} {
  func.func @_amp_mlp_kernel(%arg0: i32, %arg1: memref<8x128xbf16, #tpu.memory_space<vmem>>, %arg2: memref<128x128xbf16, #tpu.memory_space<vmem>>, %arg3: memref<1x128xf32, #tpu.memory_space<vmem>>, %arg4: memref<128x128xbf16, #tpu.memory_space<vmem>>, %arg5: memref<1x128xf32, #tpu.memory_space<vmem>>, %arg6: memref<128x128xbf16, #tpu.memory_space<vmem>>, %arg7: memref<1x128xf32, #tpu.memory_space<vmem>>, %arg8: memref<8x128xf32, #tpu.memory_space<vmem>>) attributes {dimension_semantics = [#tpu.dimension_semantics<parallel>], iteration_bounds = array<i64: 1>, scalar_prefetch = 0 : i64, scratch_operands = 0 : i64, tpu.core_type = #tpu.core_type<tc>, window_params = [{transform_indices = @transform_0, window_bounds = array<i64: 8, 128>}, {pipeline_mode = #tpu.pipeline_mode<synchronous>, transform_indices = @transform_1, window_bounds = array<i64: 128, 128>}, {pipeline_mode = #tpu.pipeline_mode<synchronous>, transform_indices = @transform_2, window_bounds = array<i64: 1, 128>}, {pipeline_mode = #tpu.pipeline_mode<synchronous>, transform_indices = @transform_3, window_bounds = array<i64: 128, 128>}, {pipeline_mode = #tpu.pipeline_mode<synchronous>, transform_indices = @transform_4, window_bounds = array<i64: 1, 128>}, {pipeline_mode = #tpu.pipeline_mode<synchronous>, transform_indices = @transform_5, window_bounds = array<i64: 128, 128>}, {pipeline_mode = #tpu.pipeline_mode<synchronous>, transform_indices = @transform_6, window_bounds = array<i64: 1, 128>}, {transform_indices = @transform_7, window_bounds = array<i64: 8, 128>}]} {
    %c0 = arith.constant 0 : index
    %c0_0 = arith.constant 0 : index
    %0 = vector.load %arg1[%c0, %c0_0] : memref<8x128xbf16, #tpu.memory_space<vmem>>, vector<8x128xbf16>
    %c0_1 = arith.constant 0 : index
    %c0_2 = arith.constant 0 : index
    %1 = vector.load %arg2[%c0_1, %c0_2] : memref<128x128xbf16, #tpu.memory_space<vmem>>, vector<128x128xbf16>
    %cst = arith.constant dense<0.000000e+00> : vector<8x128xf32>
    %2 = tpu.matmul %0, %1, %cst {dimension_numbers = #tpu.dot_dimension_numbers<[1], [0], [0], [1], [0, 0, 1, 1], [], []>} : vector<8x128xbf16>, vector<128x128xbf16>, vector<8x128xf32> -> vector<8x128xf32>
    %c0_3 = arith.constant 0 : index
    %c0_4 = arith.constant 0 : index
    %3 = vector.load %arg3[%c0_3, %c0_4] : memref<1x128xf32, #tpu.memory_space<vmem>>, vector<1x128xf32>
    %4 = vector.broadcast %3 : vector<1x128xf32> to vector<8x128xf32>
    %5 = arith.addf %2, %4 : vector<8x128xf32>
    %cst_5 = arith.constant 0.000000e+00 : f32
    %6 = vector.broadcast %cst_5 : f32 to vector<8x128xf32>
    %7 = arith.maximumf %5, %6 : vector<8x128xf32>
    %8 = arith.truncf %7 : vector<8x128xf32> to vector<8x128xbf16>
    %c0_6 = arith.constant 0 : index
    %c0_7 = arith.constant 0 : index
    %9 = vector.load %arg4[%c0_6, %c0_7] : memref<128x128xbf16, #tpu.memory_space<vmem>>, vector<128x128xbf16>
    %cst_8 = arith.constant dense<0.000000e+00> : vector<8x128xf32>
    %10 = tpu.matmul %8, %9, %cst_8 {dimension_numbers = #tpu.dot_dimension_numbers<[1], [0], [0], [1], [0, 0, 1, 1], [], []>} : vector<8x128xbf16>, vector<128x128xbf16>, vector<8x128xf32> -> vector<8x128xf32>
    %c0_9 = arith.constant 0 : index
    %c0_10 = arith.constant 0 : index
    %11 = vector.load %arg5[%c0_9, %c0_10] : memref<1x128xf32, #tpu.memory_space<vmem>>, vector<1x128xf32>
    %12 = vector.broadcast %11 : vector<1x128xf32> to vector<8x128xf32>
    %13 = arith.addf %10, %12 : vector<8x128xf32>
    %cst_11 = arith.constant 0.000000e+00 : f32
    %14 = vector.broadcast %cst_11 : f32 to vector<8x128xf32>
    %15 = arith.maximumf %13, %14 : vector<8x128xf32>
    %16 = arith.truncf %15 : vector<8x128xf32> to vector<8x128xbf16>
    %c0_12 = arith.constant 0 : index
    %c0_13 = arith.constant 0 : index
    %17 = vector.load %arg6[%c0_12, %c0_13] : memref<128x128xbf16, #tpu.memory_space<vmem>>, vector<128x128xbf16>
    %cst_14 = arith.constant dense<0.000000e+00> : vector<8x128xf32>
    %18 = tpu.matmul %16, %17, %cst_14 {dimension_numbers = #tpu.dot_dimension_numbers<[1], [0], [0], [1], [0, 0, 1, 1], [], []>} : vector<8x128xbf16>, vector<128x128xbf16>, vector<8x128xf32> -> vector<8x128xf32>
    %c0_15 = arith.constant 0 : index
    %c0_16 = arith.constant 0 : index
    %19 = vector.load %arg7[%c0_15, %c0_16] : memref<1x128xf32, #tpu.memory_space<vmem>>, vector<1x128xf32>
    %20 = vector.broadcast %19 : vector<1x128xf32> to vector<8x128xf32>
    %21 = arith.addf %18, %20 : vector<8x128xf32>
    %cst_17 = arith.constant 0.000000e+00 : f32
    %22 = vector.broadcast %cst_17 : f32 to vector<8x128xf32>
    %23 = arith.maximumf %21, %22 : vector<8x128xf32>
    %c0_18 = arith.constant 0 : index
    %c0_19 = arith.constant 0 : index
    %24 = vector.load %arg8[%c0_18, %c0_19] : memref<8x128xf32, #tpu.memory_space<vmem>>, vector<8x128xf32>
    tpu.vector_store %arg8[%c0_18, %c0_19], %23 {strides = array<i32>} : memref<8x128xf32, #tpu.memory_space<vmem>>, vector<8x128xf32>,
    return
  }
  func.func @transform_0(%arg0: i32) -> (i32, i32) {
    %c0_i32 = arith.constant 0 : i32
    %c0_i32_0 = arith.constant 0 : i32
    return %arg0, %c0_i32 : i32, i32
  }
  func.func @transform_1(%arg0: i32) -> (i32, i32) {
    %c0_i32 = arith.constant 0 : i32
    %c0_i32_0 = arith.constant 0 : i32
    %c0_i32_1 = arith.constant 0 : i32
    return %c0_i32, %c0_i32_0 : i32, i32
  }
  func.func @transform_2(%arg0: i32) -> (i32, i32) {
    %c0_i32 = arith.constant 0 : i32
    %c0_i32_0 = arith.constant 0 : i32
    %c0_i32_1 = arith.constant 0 : i32
    return %c0_i32, %c0_i32_0 : i32, i32
  }
  func.func @transform_3(%arg0: i32) -> (i32, i32) {
    %c0_i32 = arith.constant 0 : i32
    %c0_i32_0 = arith.constant 0 : i32
    %c0_i32_1 = arith.constant 0 : i32
    return %c0_i32, %c0_i32_0 : i32, i32
  }
  func.func @transform_4(%arg0: i32) -> (i32, i32) {
    %c0_i32 = arith.constant 0 : i32
    %c0_i32_0 = arith.constant 0 : i32
    %c0_i32_1 = arith.constant 0 : i32
    return %c0_i32, %c0_i32_0 : i32, i32
  }
  func.func @transform_5(%arg0: i32) -> (i32, i32) {
    %c0_i32 = arith.constant 0 : i32
    %c0_i32_0 = arith.constant 0 : i32
    %c0_i32_1 = arith.constant 0 : i32
    return %c0_i32, %c0_i32_0 : i32, i32
  }
  func.func @transform_6(%arg0: i32) -> (i32, i32) {
    %c0_i32 = arith.constant 0 : i32
    %c0_i32_0 = arith.constant 0 : i32
    %c0_i32_1 = arith.constant 0 : i32
    return %c0_i32, %c0_i32_0 : i32, i32
  }
  func.func @transform_7(%arg0: i32) -> (i32, i32) {
    %c0_i32 = arith.constant 0 : i32
    %c0_i32_0 = arith.constant 0 : i32
    return %arg0, %c0_i32 : i32, i32
  }
}

</mosaic_0001>

<bundles_post_ra>
// kernel: amp_mlp_forward.1
= control target key start
LH: loop header
LB: loop body
LE: loop exit
PB: predicated region body
PF: predicated region fallthrough
CT: control target
= control target key end

     0   :  { %12 = vsyncpa [#allocation3], 0  ;;  %s819_s0 = inlined_call_operand.vmem [shape: bf16[8,128], index: 0, kind: input, shape index: {}]   ;;  %s820_s1 = inlined_call_operand.hbm [shape: bf16[128,128], index: 1, kind: input, shape index: {}]   ;;  %s821_s2 = inlined_call_operand.vmem [shape: f32[1,128], index: 2, kind: input, shape index: {}]   ;;  %s822_s3 = inlined_call_operand.hbm [shape: bf16[128,128], index: 3, kind: input, shape index: {}]   ;;  %s823_s4 = inlined_call_operand.vmem [shape: f32[1,128], index: 4, kind: input, shape index: {}]   ;;  %s824_s5 = inlined_call_operand.hbm [shape: bf16[128,128], index: 5, kind: input, shape index: {}]   ;;  %s825_s6 = inlined_call_operand.vmem [shape: f32[1,128], index: 6, kind: input, shape index: {}]   ;;  %s826_s7 = inlined_call_operand.hbm [shape: f32[8,128], index: 7, kind: output, shape index: {}]  }
   0x1   :  { %13 = vsyncpa [#allocation6], 0 }
   0x2   :  { %14 = vsyncpa [#allocation4], 0  ;;  %s665_s24 = smov [#allocation5]   ;;  %s666_s26 = smov [#allocation2]  }
   0x3   :  { %s36_s25 = sshll.u32 %s665_s24, 4  ;;  %s22_s27 = sshll.u32 %s666_s26, 4  ;;  %s37_s25 = int_to_ptr.vmem [resolvable:$true] %s36_s25  ;;  %s713_s27 = int_to_ptr.vmem [resolvable:$true] %s22_s27 }
   0x4   :  { %s571_s30 = scalar_lea.hbm %s822_s3, 1024 }
   0x5   :  { %p572_p0 = scmp.ne.s32.totalorder %s822_s3, %s571_s30  ;;  %p575_p1 = scmp.lt.u32.totalorder %s571_s30, %s822_s3 }
   0x7   :  { %p577_p2 = pnand %p575_p1, %p572_p0 }
   0x9   :  { %580 = shalt.err (!%p577_p2)
}
   0xa   :  { %s581_s12 = scalar_lea.vmem %s37_s25, 1024  ;;  %p586_p4 = scmp.lt.s32.totalorder %s37_s25, %s37_s25 }
   0xb   :  { %p582_p3 = scmp.ne.s32.totalorder %s37_s25, %s581_s12  ;;  %p587_p5 = scmp.lt.s32.totalorder %s581_s12, %s581_s12 }
   0xd   :  { %p588_p6 = por %p587_p5, %p586_p4 }
   0xf   :  { %p589_p7 = pnand %p588_p6, %p582_p3 }
  0x11   :  { %592 = shalt.err (!%p589_p7)
}
  0x12   :  { %s667_s13 = smov 64   ;;  %s668_s14 = smov 4  }
  0x13   :  { %42 = dma.hbm_to_vmem [thread:$0]  %s822_s3, 1024, %s37_s25, [#allocation6], %s667_s13, %s667_s13, %s668_s14  }
  0x14   :  { %s593_s19 = scalar_lea.hbm %s820_s1, 1024 }
  0x15   :  { %p594_p8 = scmp.ne.s32.totalorder %s820_s1, %s593_s19  ;;  %p597_p9 = scmp.lt.u32.totalorder %s593_s19, %s820_s1 }
  0x17   :  { %p599_p10 = pnand %p597_p9, %p594_p8 }
  0x19   :  { %602 = shalt.err (!%p599_p10)
}
  0x1a   :  { %s603_s24 = scalar_lea.vmem %s713_s27, 1024  ;;  %p608_p12 = scmp.lt.s32.totalorder %s713_s27, %s713_s27 }
  0x1b   :  { %p604_p11 = scmp.ne.s32.totalorder %s713_s27, %s603_s24  ;;  %p609_p13 = scmp.lt.s32.totalorder %s603_s24, %s603_s24 }
  0x1d   :  { %p610_p0 = por %p609_p13, %p608_p12 }
  0x1f   :  { %p611_p1 = pnand %p610_p0, %p604_p11 }
  0x21   :  { %614 = shalt.err (!%p611_p1)
}
  0x22   :  { %28 = dma.hbm_to_vmem [thread:$0]  %s820_s1, 1024, %s713_s27, [#allocation3], %s667_s13, %s667_s13, %s668_s14  }
  0x23   :  { %s669_s26 = smov [#allocation7]   ;;  %s615_s8 = scalar_lea.hbm %s824_s5, 1024 }
  0x24   :  { %s50_s28 = sshll.u32 %s669_s26, 4  ;;  %p616_p2 = scmp.ne.s32.totalorder %s824_s5, %s615_s8  ;;  %s51_s28 = int_to_ptr.vmem [resolvable:$true] %s50_s28 }
  0x25   :  { %p619_p3 = scmp.lt.u32.totalorder %s615_s8, %s824_s5 }
  0x27   :  { %p621_p4 = pnand %p619_p3, %p616_p2 }
  0x29   :  { %624 = shalt.err (!%p621_p4)
}
  0x2a   :  { %s625_s15 = scalar_lea.vmem %s51_s28, 1024  ;;  %p630_p6 = scmp.lt.s32.totalorder %s51_s28, %s51_s28 }
  0x2b   :  { %p626_p5 = scmp.ne.s32.totalorder %s51_s28, %s625_s15  ;;  %p631_p7 = scmp.lt.s32.totalorder %s625_s15, %s625_s15 }
  0x2d   :  { %p632_p8 = por %p631_p7, %p630_p6 }
  0x2f   :  { %p633_p9 = pnand %p632_p8, %p626_p5 }
  0x31   :  { %636 = shalt.err (!%p633_p9)
}
  0x32   :  { %56 = dma.hbm_to_vmem [thread:$0]  %s824_s5, 1024, %s51_s28, [#allocation6], %s667_s13, %s667_s13, %s668_s14  }
  0x33   :  { %659 = dma.done.wait [#allocation3], 1024  }
  0x34   :  { %660 = vsyncadd [#allocation3], 4294966272 }
  0x35   :  { %661 = dma.done.wait [#allocation6], 2048  }
  0x36   :  { %662 = vsyncadd [#allocation6], 4294965248  ;;  %v670_v0 = vmov 0.0   ;;  %vm671_vm0 = vmmov 0   ;;  %v547_v1 = vld [vmem:[#allocation2] sm:$0xff]   ;;  %v548_v2 = vld [vmem:[#allocation2 + $0x8] sm:$0xff]  }
  0x37   :  { %479 = vmatprep.subr.bf16.mxu0 %v670_v0  ;;  %495 = vmatprep.mubr.msk.bf16.mxu0 %vm671_vm0, %v670_v0  ;;  %v549_v3 = vld [vmem:[#allocation2 + $0x10] sm:$0xff]   ;;  %v555_v4 = vld [vmem:[#allocation5] sm:$0xff]   ;;  %v550_v5 = vld [vmem:[#allocation2 + $0x18] sm:$0xff]   ;;  %s672_s19 = smov [#allocation8]  }
  0x38   :  { %499 = vmatprep.subr.bf16.mxu1 %v670_v0  ;;  %515 = vmatprep.mubr.msk.bf16.mxu1 %vm671_vm0, %v670_v0  ;;  %v556_v6 = vld [vmem:[#allocation5 + $0x8] sm:$0xff]   ;;  %v551_v7 = vld [vmem:[#allocation2 + $0x20] sm:$0xff]   ;;  %v557_v8 = vld [vmem:[#allocation5 + $0x10] sm:$0xff]   ;;  %s415_s20 = sshll.u32 %s672_s19, 4  ;;  %s416_s20 = int_to_ptr.vmem [resolvable:$true] %s415_s20 }
  0x39   :  { %480 = vmatpush3.bf16.msra.mxu0 %v547_v1  ;;  %500 = vmatpush3.bf16.msra.mxu1 %v555_v4  ;;  %v552_v9 = vld [vmem:[#allocation2 + $0x28] sm:$0xff]   ;;  %v558_v10 = vld [vmem:[#allocation5 + $0x18] sm:$0xff]   ;;  %v553_v11 = vld [vmem:[#allocation2 + $0x30] sm:$0xff]   ;;  %p642_p11 = scmp.lt.s32.totalorder %s416_s20, %s416_s20 }
  0x3a   :  { %481 = vmatprep.subr.bf16.mxu0 %v670_v0  ;;  %501 = vmatprep.subr.bf16.mxu1 %v670_v0  ;;  %v559_v12 = vld [vmem:[#allocation5 + $0x20] sm:$0xff]   ;;  %v554_v13 = vld [vmem:[#allocation2 + $0x38] sm:$0xff]   ;;  %v560_v14 = vld [vmem:[#allocation5 + $0x28] sm:$0xff]  }
  0x3b   :  { %v69_v15 = vld [vmem:[%s819_s0] sm:$0xf]  ;;  %v561_v16 = vld [vmem:[#allocation5 + $0x30] sm:$0xff]   ;;  %v563_v18 = vld [vmem:[#allocation7] sm:$0xff]  }
  0x3c   :  { %v562_v17 = vld [vmem:[#allocation5 + $0x38] sm:$0xff]   ;;  %v564_v19 = vld [vmem:[#allocation7 + $0x8] sm:$0xff]   ;;  %v565_v20 = vld [vmem:[#allocation7 + $0x10] sm:$0xff]  }
  0x3d   :  { %482 = vmatpush3.bf16.msra.mxu0 %v548_v2  ;;  %502 = vmatpush3.bf16.msra.mxu1 %v556_v6  ;;  %v566_v21 = vld [vmem:[#allocation7 + $0x18] sm:$0xff]   ;;  %v567_v22 = vld [vmem:[#allocation7 + $0x20] sm:$0xff]   ;;  %v568_v23 = vld [vmem:[#allocation7 + $0x28] sm:$0xff]  }
  0x3e   :  { %483 = vmatprep.subr.bf16.mxu0 %v670_v0  ;;  %503 = vmatprep.subr.bf16.mxu1 %v670_v0  ;;  %v425_v24 = vld [vmem:[%s821_s2] ss:$0 sm:$0xff]  ;;  %v569_v32 = vld [vmem:[#allocation7 + $0x30] sm:$0xff]  }
  0x3f   :  { %v570_v33 = vld [vmem:[#allocation7 + $0x38] sm:$0xff]  }
  0x40   :  { %v434_v34 = vld [vmem:[%s823_s4] ss:$0 sm:$0xff]  ;;  %s637_s4 = scalar_lea.vmem %s416_s20, 128 }
  0x41   :  { %484 = vmatpush3.bf16.msra.mxu0 %v549_v3  ;;  %504 = vmatpush3.bf16.msra.mxu1 %v557_v8  ;;  %v443_v42 = vld [vmem:[%s825_s6] ss:$0 sm:$0xff]  ;;  %p638_p10 = scmp.ne.s32.totalorder %s416_s20, %s637_s4  ;;  %p643_p12 = scmp.lt.s32.totalorder %s637_s4, %s637_s4 }
  0x42   :  { %485 = vmatprep.subr.bf16.mxu0 %v670_v0  ;;  %505 = vmatprep.subr.bf16.mxu1 %v670_v0 }
  0x43   :  { %p644_p13 = por %p643_p12, %p642_p11 }
  0x45   :  { %486 = vmatpush3.bf16.msra.mxu0 %v550_v5  ;;  %506 = vmatpush3.bf16.msra.mxu1 %v558_v10  ;;  %p645_p0 = pnand %p644_p13, %p638_p10 }
  0x46   :  { %487 = vmatprep.subr.bf16.mxu0 %v670_v0  ;;  %507 = vmatprep.subr.bf16.mxu1 %v670_v0 }
  0x49   :  { %488 = vmatpush3.bf16.msra.mxu0 %v551_v7  ;;  %508 = vmatpush3.bf16.msra.mxu1 %v559_v12 }
  0x4a   :  { %489 = vmatprep.subr.bf16.mxu0 %v670_v0  ;;  %509 = vmatprep.subr.bf16.mxu1 %v670_v0 }
  0x4d   :  { %490 = vmatpush3.bf16.msra.mxu0 %v552_v9  ;;  %510 = vmatpush3.bf16.msra.mxu1 %v560_v14 }
  0x4e   :  { %491 = vmatprep.subr.bf16.mxu0 %v670_v0  ;;  %511 = vmatprep.subr.bf16.mxu1 %v670_v0 }
  0x51   :  { %492 = vmatpush3.bf16.msra.mxu0 %v553_v11  ;;  %512 = vmatpush3.bf16.msra.mxu1 %v561_v16 }
  0x52   :  { %493 = vmatprep.subr.bf16.mxu0 %v670_v0  ;;  %513 = vmatprep.subr.bf16.mxu1 %v670_v0 }
  0x55   :  { %494 = vmatpush3.bf16.msra.mxu0 %v554_v13  ;;  %514 = vmatpush3.bf16.msra.mxu1 %v562_v17 }
  0x56   :  { %519 = vmatprep.subr.bf16.mxu0 %v670_v0 }
  0x58   :  { %496 = vmatmul.mubr.bf16.vlgmr.msra.gmra.mrb[0].mxu0 %v69_v15 }
  0x59   :  { %535 = vmatprep.mubr.msk.bf16.mxu0 %vm671_vm0, %v670_v0  ;;  %520 = vmatpush3.bf16.msra.mxu0 %v563_v18 }
  0x5a   :  { %521 = vmatprep.subr.bf16.mxu0 %v670_v0 }
  0x5d   :  { %522 = vmatpush3.bf16.msra.mxu0 %v564_v19 }
  0x5e   :  { %523 = vmatprep.subr.bf16.mxu0 %v670_v0 }
  0x61   :  { %524 = vmatpush3.bf16.msra.mxu0 %v565_v20 }
  0x62   :  { %525 = vmatprep.subr.bf16.mxu0 %v670_v0 }
  0x65   :  { %526 = vmatpush3.bf16.msra.mxu0 %v566_v21 }
  0x66   :  { %527 = vmatprep.subr.bf16.mxu0 %v670_v0 }
  0x69   :  { %528 = vmatpush3.bf16.msra.mxu0 %v567_v22 }
  0x6a   :  { %529 = vmatprep.subr.bf16.mxu0 %v670_v0 }
  0x6d   :  { %530 = vmatpush3.bf16.msra.mxu0 %v568_v23 }
  0x6e   :  { %531 = vmatprep.subr.bf16.mxu0 %v670_v0 }
  0x71   :  { %532 = vmatpush3.bf16.msra.mxu0 %v569_v32 }
  0x72   :  { %533 = vmatprep.subr.bf16.mxu0 %v670_v0 }
  0x75   :  { %534 = vmatpush3.bf16.msra.mxu0 %v570_v33 }
 0x12b   :  { %v175_v25 = vpop.f32.mrb[0].mxu0 }
 0x12c   :  { %v176_v26 = vadd.f32 %v425_v24, %v175_v25  ;;  %v497_v27 = vpop.f32.mrb[1].mxu0 }
 0x12d   :  { %v178_v28 = vpop.f32.mrb[2].mxu0 }
 0x12e   :  { %v181_v29 = vmax.f32 %v176_v26, 0.0  ;;  %v498_v30 = vpop.f32.mrb[3].mxu0 }
 0x130   :  { %v182_v31 = vpack.c.bf16 %v181_v29, %v181_v29 }
 0x132   :  { %516 = vmatmul.mubr.bf16.vlgmr.msra.gmra.mrb[0].mxu1 %v182_v31 }
 0x205   :  { %v288_v35 = vpop.f32.mrb[0].mxu1 }
 0x206   :  { %v289_v36 = vadd.f32 %v434_v34, %v288_v35  ;;  %v517_v37 = vpop.f32.mrb[1].mxu1 }
 0x207   :  { %v291_v38 = vpop.f32.mrb[2].mxu1 }
 0x208   :  { %v294_v39 = vmax.f32 %v289_v36, 0.0  ;;  %v518_v40 = vpop.f32.mrb[3].mxu1 }
 0x20a   :  { %v295_v41 = vpack.c.bf16 %v294_v39, %v294_v39 }
 0x20c   :  { %536 = vmatmul.mubr.bf16.vlgmr.msra.gmra.mrb[4].mxu0 %v295_v41 }
 0x2df   :  { %v401_v43 = vpop.f32.mrb[4].mxu0 }
 0x2e0   :  { %v402_v44 = vadd.f32 %v443_v42, %v401_v43  ;;  %v537_v45 = vpop.f32.mrb[5].mxu0 }
 0x2e1   :  { %v404_v46 = vpop.f32.mrb[6].mxu0 }
 0x2e2   :  { %v407_v47 = vmax.f32 %v402_v44, 0.0  ;;  %v538_v48 = vpop.f32.mrb[7].mxu0 }
 0x2e4   :  { %408 = vst [vmem:[#allocation8] sm:$0xff] %v407_v47 }
 0x2e5   :  { %648 = shalt.err (!%p645_p0)
}
 0x2e6   :  { %s649_s6 = scalar_lea.hbm %s826_s7, 128 }
 0x2e7   :  { %p650_p1 = scmp.ne.s32.totalorder %s826_s7, %s649_s6  ;;  %p653_p2 = scmp.lt.u32.totalorder %s649_s6, %s826_s7 }
 0x2e9   :  { %p655_p3 = pnand %p653_p2, %p650_p1 }
 0x2eb   :  { %658 = shalt.err (!%p655_p3)
}
 0x2ec   :  { %418 = dma.vmem_to_hbm [thread:$0]  %s416_s20, 128, %s826_s7, [#allocation4]  }
 0x2ed   :  { %663 = dma.done.wait [#allocation4], 128  }
 0x2ee   :  { %664 = vsyncadd [#allocation4], 4294967168 }
 0x2ef   :  { %422 = vsyncpa [#allocation3], 1 }
 0x2f0   :  { %423 = vsyncpa [#allocation6], 1 }
 0x2f1   :  { %424 = vsyncpa [#allocation4], 1 }

</bundles_post_ra>
